<compile_context>
chip_gen: v6e
topology: v6e:2x2x1
jax: 0.10.0
libtpu: 0.0.40
codegen_flags: <defaults>
</compile_context>

<pallas_src>
import functools

import jax
import jax.numpy as jnp
import numpy as np
from jax.experimental import pallas as pl
from jax.experimental.pallas import tpu as pltpu

# MXU input dtype: bf16 gives 2-4x effective MXU throughput on v5e/v6e/v7x.
# Accumulation stays f32 (preferred_element_type) and all elementwise /
# LayerNorm math stays f32; only MXU boundaries are cast.
MXU_DTYPE = jnp.bfloat16


def _layernorm(z, g, b, eps=1e-5):
    mean = jnp.mean(z, axis=-1, keepdims=True)
    var = jnp.mean((z - mean) ** 2, axis=-1, keepdims=True)
    return (z - mean) * jax.lax.rsqrt(var + eps) * g + b


# ---------------------------------------------------------------------------
# Kernel: one (batch_tile, layer) grid step of the fused transformer stack.
# ---------------------------------------------------------------------------
def attention_blocks_kernel(
    x_ref,       # (bt*T, C)   flattened input block (read only at layer 0)
    wqkv_ref,    # (1, C, 3H)  fused QKV weight (bf16)
    wp_ref,      # (1, H, H)   output projection weight (bf16)
    w1_ref,      # (1, H, F)   FFN up weight (bf16)
    w2_ref,      # (1, F, H)   FFN down weight (bf16)
    biash_ref,   # (1, 6, H)   f32 rows: [bp, b2, g1, be1, g2, be2]
    b1_ref,      # (1, 1, F)   f32 FFN up bias
    o_ref,       # (bt*T, H)   output block (written at the last layer)
    h_sc,        # VMEM (bt*T, H) f32: residual stream, persists across layers
    *,
    bt,
    T,
    nheads,
    head_dim,
    inv_scale,
):
    layer = pl.program_id(1)
    H = nheads * head_dim
    BH = bt * nheads

    # Load activations into the resident VMEM scratch only at the first layer
    # of each batch tile.
    @pl.when(layer == 0)
    def _():
        h_sc[...] = x_ref[...].astype(jnp.float32)

    x = h_sc[...]                                             # (bt*T, H) f32

    bias = biash_ref[0]                                       # (6, H) f32
    bp = bias[0:1, :]
    b2 = bias[1:2, :]
    g1 = bias[2:3, :]
    be1 = bias[3:4, :]
    g2 = bias[4:5, :]
    be2 = bias[5:6, :]
    b1 = b1_ref[0]                                            # (1, F) f32

    # --- fused QKV projection: one (bt*T, C) x (C, 3H) bf16 MXU pass ---
    qkv = jnp.dot(x.astype(MXU_DTYPE), wqkv_ref[0],
                  preferred_element_type=jnp.float32)         # (bt*T, 3H) f32
    # fold 1/scale into q (f32) instead of dividing the (T, T) score matrix
    q = qkv[:, 0 * H:1 * H] * inv_scale
    k = qkv[:, 1 * H:2 * H]
    v = qkv[:, 2 * H:3 * H]

    # heads folded into the batch dim of a 3-D batched matmul:
    # (bt*T, H) -> (bt, T, nh, d) -> (bt, nh, T, d) -> (bt*nh, T, d)
    def to_heads(z):
        return (z.reshape(bt, T, nheads, head_dim)
                 .transpose(0, 2, 1, 3)
                 .reshape(BH, T, head_dim))

    qh = to_heads(q)
    kh = to_heads(k)
    vh = to_heads(v)

    # causal mask kept (T, T); jnp.where broadcasts it over (bt*nh, T, T)
    row = jax.lax.broadcasted_iota(jnp.int32, (T, T), 0)
    col = jax.lax.broadcasted_iota(jnp.int32, (T, T), 1)
    causal = row >= col

    s = jnp.einsum('bqd,bkd->bqk', qh.astype(MXU_DTYPE), kh.astype(MXU_DTYPE),
                   preferred_element_type=jnp.float32)        # (bt*nh, T, T)
    # -inf is safe here: the causal mask always keeps the diagonal per row.
    s = jnp.where(causal, s, -jnp.inf)

    m = jnp.max(s, axis=-1, keepdims=True)
    p = jnp.exp(s - m)                                        # unnormalized
    denom = jnp.sum(p, axis=-1, keepdims=True)                # (bt*nh, T, 1)
    # EUP approximate reciprocal + one Newton step -> ~f32-accurate 1/denom
    r = pl.reciprocal(denom, approx=True)
    r = r * (2.0 - denom * r)

    # PV matmul on the unnormalized probabilities, then a head_dim-wide
    # normalization (cheaper than a T-wide p*r multiply).
    o = jnp.einsum('bqk,bkd->bqd', p.astype(MXU_DTYPE), vh.astype(MXU_DTYPE),
                   preferred_element_type=jnp.float32)        # (bt*nh, T, d)
    o = o * r

    # (bt*nh, T, d) -> (bt, nh, T, d) -> (bt, T, nh, d) -> (bt*T, H)
    attn = (o.reshape(bt, nheads, T, head_dim)
             .transpose(0, 2, 1, 3)
             .reshape(bt * T, H))

    # --- output projection + residual + LayerNorm1 ---
    proj = jnp.dot(attn.astype(MXU_DTYPE), wp_ref[0],
                   preferred_element_type=jnp.float32) + bp
    n1 = _layernorm(proj + x, g1, be1)

    # --- FFN + residual to the ORIGINAL x (matches the PyTorch module) ---
    ff = jnp.dot(n1.astype(MXU_DTYPE), w1_ref[0],
                 preferred_element_type=jnp.float32) + b1
    ff = jnp.maximum(ff, 0.0)
    ff = jnp.dot(ff.astype(MXU_DTYPE), w2_ref[0],
                 preferred_element_type=jnp.float32) + b2
    n2 = _layernorm(ff + x, g2, be2)

    # keep the residual stream resident for the next layer
    h_sc[...] = n2

    @pl.when(layer == pl.num_programs(1) - 1)
    def _():
        o_ref[...] = n2.astype(o_ref.dtype)


# ---------------------------------------------------------------------------
# Wrapper: one pallas_call for the whole stack of layers.
# ---------------------------------------------------------------------------
def stack_params(all_params):
    stk = lambda name: jnp.stack([p[name] for p in all_params])
    # Big weights pre-cast to the MXU dtype on the host: halves HBM->VMEM DMA
    # bytes per layer and halves the double-buffered weight VMEM footprint.
    wqkv = jnp.stack([jnp.concatenate([p["wq"], p["wk"], p["wv"]], axis=1)
                      for p in all_params]).astype(MXU_DTYPE)   # (L, C, 3H)
    wp = stk("wp").astype(MXU_DTYPE)                            # (L, H, H)
    w1 = stk("w1").astype(MXU_DTYPE)                            # (L, H, F)
    w2 = stk("w2").astype(MXU_DTYPE)                            # (L, F, H)
    # Fold the tiny per-layer vectors into two streamed inputs (f32).
    bias_h = jnp.stack([jnp.concatenate(
        [p["bp"], p["b2"], p["g1"], p["be1"], p["g2"], p["be2"]], axis=0)
        for p in all_params])                                   # (L, 6, H)
    b1 = stk("b1")                                              # (L, 1, F)
    return dict(wqkv=wqkv, wp=wp, w1=w1, w2=w2, bias_h=bias_h, b1=b1)


def _vmem_limit_bytes(bt, T, C, H, F, nheads):
    """Explicit VMEM budget: double-buffered weights + IO blocks + scratch +
    main f32 intermediates, with 2x headroom (floored at 32 MiB so the v5e
    16 MiB default scoped limit is raised)."""
    wb = jnp.dtype(MXU_DTYPE).itemsize
    n_rows = bt * T
    per_layer_w = (C * 3 * H + H * H + 2 * H * F) * wb + (6 * H + F) * 4
    io_blocks = (n_rows * C + n_rows * H) * 4
    resident = n_rows * H * 4                                   # h_sc
    inter = (n_rows * 3 * H                                     # qkv
             + 3 * n_rows * H                                   # qh/kh/vh
             + 2 * bt * nheads * T * T                          # scores, probs
             + n_rows * F) * 4                                  # ffn hidden
    est = 2 * per_layer_w + 2 * io_blocks + resident + inter
    return int(min(100 * 1024 * 1024, max(32 * 1024 * 1024, 2 * est)))


def attention_blocks(x, all_params, *, nheads, head_dim, scale,
                     batch_tile=None):
    B, T, C = x.shape
    H = nheads * head_dim
    L = len(all_params)
    F = all_params[0]["w1"].shape[1]
    assert C == H, "residual `out + x` requires embed_dim == hidden_dim"

    if batch_tile is None:
        # Default nbt == 2: one batch tile per v7x TensorCore (megacore).
        # On single-TC chips (v5e/v6e) pass batch_tile=B (nbt=1) so each
        # layer's weights are streamed from HBM exactly once.
        batch_tile = B // 2 if (B % 2 == 0 and B >= 2) else B
    bt = batch_tile
    assert B % bt == 0
    nbt = B // bt

    sp = stack_params(all_params)
    w_order = [sp["wqkv"], sp["wp"], sp["w1"], sp["w2"], sp["bias_h"], sp["b1"]]
    # Each weight: block is one layer's slab, indexed by the layer grid axis.
    w_specs = [pl.BlockSpec((1,) + a.shape[1:], lambda b, l: (l, 0, 0))
               for a in w_order]

    x2 = x.reshape(B * T, C)   # lane-friendlier 2-D slab; no (1,T,C) blocks

    kernel = functools.partial(
        attention_blocks_kernel, bt=bt, T=T, nheads=nheads,
        head_dim=head_dim, inv_scale=float(1.0 / scale))

    out2 = pl.pallas_call(
        kernel,
        out_shape=jax.ShapeDtypeStruct((B * T, H), x.dtype),
        grid_spec=pltpu.PrefetchScalarGridSpec(
            num_scalar_prefetch=0,
            # Layer axis MUST be innermost and "arbitrary": the VMEM residual
            # scratch and last-layer-only output write depend on it.
            grid=(nbt, L),
            in_specs=[pl.BlockSpec((bt * T, C), lambda b, l: (b, 0))] + w_specs,
            out_specs=pl.BlockSpec((bt * T, H), lambda b, l: (b, 0)),
            scratch_shapes=[
                pltpu.VMEM((bt * T, H), jnp.float32),   # residual stream
            ],
        ),
        compiler_params=pltpu.CompilerParams(
            dimension_semantics=("parallel", "arbitrary"),
            vmem_limit_bytes=_vmem_limit_bytes(bt, T, C, H, F, nheads),
        ),
    )(x2, *w_order)
    return out2.reshape(B, T, H)


# ---------------------------------------------------------------------------
# Deterministic parameter init (synthetic weights, PyTorch-shaped)
# ---------------------------------------------------------------------------
def init_layer_params(key, embed_dim, hidden_dim, ff_dim):
    ks = jax.random.split(key, 8)
    u = lambda k, shape, fan_in: jax.random.uniform(
        k, shape, jnp.float32, -1.0 / np.sqrt(fan_in), 1.0 / np.sqrt(fan_in))
    return {
        # nn.Linear stores (out, in); we keep the transposed (in, out) layout.
        "wq": u(ks[0], (embed_dim, hidden_dim), embed_dim),
        "wk": u(ks[1], (embed_dim, hidden_dim), embed_dim),
        "wv": u(ks[2], (embed_dim, hidden_dim), embed_dim),
        "wp": u(ks[3], (hidden_dim, hidden_dim), hidden_dim),
        "bp": u(ks[4], (1, hidden_dim), hidden_dim),
        "w1": u(ks[5], (hidden_dim, ff_dim), hidden_dim),
        "b1": u(ks[6], (1, ff_dim), hidden_dim),
        "w2": u(ks[7], (ff_dim, hidden_dim), ff_dim),
        "b2": jnp.zeros((1, hidden_dim), jnp.float32),
        # LayerNorm defaults: weight=1, bias=0
        "g1": jnp.ones((1, hidden_dim), jnp.float32),
        "be1": jnp.zeros((1, hidden_dim), jnp.float32),
        "g2": jnp.ones((1, hidden_dim), jnp.float32),
        "be2": jnp.zeros((1, hidden_dim), jnp.float32),
    }


# ---------------------------------------------------------------------------
# Pure-JAX reference (f32, for correctness checking)
# ---------------------------------------------------------------------------
def ref_layer(x, p, *, nheads, head_dim, scale):
    b, t, c = x.shape
    H = p["wq"].shape[1]
    q = x @ p["wq"]
    k = x @ p["wk"]
    v = x @ p["wv"]
    q = q.reshape(b, t, nheads, head_dim).transpose(0, 2, 1, 3)
    k = k.reshape(b, t, nheads, head_dim).transpose(0, 2, 1, 3)
    v = v.reshape(b, t, nheads, head_dim).transpose(0, 2, 1, 3)
    energy = jnp.einsum("bhtd,bhsd->bhts", q, k) / scale
    mask = jnp.tril(jnp.ones((t, t)))
    energy = jnp.where(mask == 0, -jnp.inf, energy)
    attn = jax.nn.softmax(energy, axis=-1)
    out = jnp.einsum("bhts,bhsd->bhtd", attn, v)
    out = out.transpose(0, 2, 1, 3).reshape(b, t, H)
    out = out @ p["wp"] + p["bp"]
    out = out + x
    ln = lambda z, g, be: (z - z.mean(-1, keepdims=True)) / jnp.sqrt(
        z.var(-1, keepdims=True) + 1e-5) * g + be
    out = ln(out, p["g1"], p["be1"])
    ff = jnp.maximum(out @ p["w1"] + p["b1"], 0.0) @ p["w2"] + p["b2"]
    out = ff + x
    out = ln(out, p["g2"], p["be2"])
    return out


if __name__ == "__main__":
    # Small, forward-consistent shapes.
    # NOTE: residual `out + x` in the module requires embed_dim == hidden_dim.
    # NOTE: scale = sqrt(hidden_dim) (not sqrt(head_dim)) — matches the module.
    nlayers = 2
    embed_dim = 32
    hidden_dim = 32
    nheads = 4
    ffn_dim = 64
    block_size = 8
    B, T = 2, 8

    head_dim = hidden_dim // nheads
    scale = float(hidden_dim ** 0.5)

    key = jax.random.PRNGKey(0)
    kx, *layer_keys = jax.random.split(key, nlayers + 1)
    x = jax.random.normal(kx, (B, T, embed_dim), jnp.float32)

    all_params = [
        init_layer_params(layer_keys[i], embed_dim, hidden_dim, ffn_dim)
        for i in range(nlayers)
    ]

    out = attention_blocks(x, all_params, nheads=nheads,
                           head_dim=head_dim, scale=scale)
    out = jax.block_until_ready(out)

    # sanity check against the f32 pure-JAX reference (tolerance loosened for
    # the bf16 MXU inputs, as flagged in the performance review)
    ref = x
    for p in all_params:
        ref = ref_layer(ref, p, nheads=nheads, head_dim=head_dim, scale=scale)
    np.testing.assert_allclose(np.asarray(out), np.asarray(ref),
                               rtol=5e-2, atol=5e-2)

    print("KERNEL_OK")
</pallas_src>

<mosaic_0001>
module attributes {stable_mosaic.version = 11 : i64} {
  func.func @attention_blocks_kernel(%arg0: i32, %arg1: i32, %arg2: memref<8x32xf32, #tpu.memory_space<vmem>>, %arg3: memref<1x32x96xbf16, #tpu.memory_space<vmem>>, %arg4: memref<1x32x32xbf16, #tpu.memory_space<vmem>>, %arg5: memref<1x32x64xbf16, #tpu.memory_space<vmem>>, %arg6: memref<1x64x32xbf16, #tpu.memory_space<vmem>>, %arg7: memref<1x6x32xf32, #tpu.memory_space<vmem>>, %arg8: memref<1x1x64xf32, #tpu.memory_space<vmem>>, %arg9: memref<8x32xf32, #tpu.memory_space<vmem>>, %arg10: memref<8x32xf32, #tpu.memory_space<vmem>>) attributes {dimension_semantics = [#tpu.dimension_semantics<parallel>, #tpu.dimension_semantics<arbitrary>], iteration_bounds = array<i64: 2, 2>, scalar_prefetch = 0 : i64, scratch_operands = 1 : i64, tpu.core_type = #tpu.core_type<tc>, window_params = [{transform_indices = @transform_0, window_bounds = array<i64: 8, 32>}, {transform_indices = @transform_1, window_bounds = array<i64: 1, 32, 96>}, {transform_indices = @transform_2, window_bounds = array<i64: 1, 32, 32>}, {transform_indices = @transform_3, window_bounds = array<i64: 1, 32, 64>}, {transform_indices = @transform_4, window_bounds = array<i64: 1, 64, 32>}, {transform_indices = @transform_5, window_bounds = array<i64: 1, 6, 32>}, {transform_indices = @transform_6, window_bounds = array<i64: 1, 1, 64>}, {transform_indices = @transform_7, window_bounds = array<i64: 8, 32>}]} {
    %c0_i32 = arith.constant 0 : i32
    %0 = arith.cmpi eq, %arg1, %c0_i32 : i32
    %1 = arith.extui %0 : i1 to i32
    %c0_i32_0 = arith.constant 0 : i32
    %2 = arith.cmpi ne, %1, %c0_i32_0 : i32
    scf.if %2 {
      %c0_44 = arith.constant 0 : index
      %c0_45 = arith.constant 0 : index
      %132 = vector.load %arg2[%c0_44, %c0_45] : memref<8x32xf32, #tpu.memory_space<vmem>>, vector<8x32xf32>
      %c0_46 = arith.constant 0 : index
      %c0_47 = arith.constant 0 : index
      %133 = vector.load %arg10[%c0_46, %c0_47] : memref<8x32xf32, #tpu.memory_space<vmem>>, vector<8x32xf32>
      tpu.vector_store %arg10[%c0_46, %c0_47], %132 {strides = array<i32>} : memref<8x32xf32, #tpu.memory_space<vmem>>, vector<8x32xf32>,
    } else {
    }
    %c0 = arith.constant 0 : index
    %c0_1 = arith.constant 0 : index
    %3 = vector.load %arg10[%c0, %c0_1] : memref<8x32xf32, #tpu.memory_space<vmem>>, vector<8x32xf32>
    %c0_2 = arith.constant 0 : index
    %c0_3 = arith.constant 0 : index
    %c0_4 = arith.constant 0 : index
    %4 = vector.load %arg7[%c0_2, %c0_3, %c0_4] : memref<1x6x32xf32, #tpu.memory_space<vmem>>, vector<1x6x32xf32>
    %5 = vector.shape_cast %4 : vector<1x6x32xf32> to vector<6x32xf32>
    %6 = vector.extract_strided_slice %5 {offsets = [0, 0], sizes = [1, 32], strides = [1, 1]} : vector<6x32xf32> to vector<1x32xf32>
    %7 = vector.extract_strided_slice %5 {offsets = [1, 0], sizes = [1, 32], strides = [1, 1]} : vector<6x32xf32> to vector<1x32xf32>
    %8 = vector.extract_strided_slice %5 {offsets = [2, 0], sizes = [1, 32], strides = [1, 1]} : vector<6x32xf32> to vector<1x32xf32>
    %9 = vector.extract_strided_slice %5 {offsets = [3, 0], sizes = [1, 32], strides = [1, 1]} : vector<6x32xf32> to vector<1x32xf32>
    %10 = vector.extract_strided_slice %5 {offsets = [4, 0], sizes = [1, 32], strides = [1, 1]} : vector<6x32xf32> to vector<1x32xf32>
    %11 = vector.extract_strided_slice %5 {offsets = [5, 0], sizes = [1, 32], strides = [1, 1]} : vector<6x32xf32> to vector<1x32xf32>
    %c0_5 = arith.constant 0 : index
    %c0_6 = arith.constant 0 : index
    %c0_7 = arith.constant 0 : index
    %12 = vector.load %arg8[%c0_5, %c0_6, %c0_7] : memref<1x1x64xf32, #tpu.memory_space<vmem>>, vector<1x1x64xf32>
    %13 = vector.shape_cast %12 : vector<1x1x64xf32> to vector<1x64xf32>
    %14 = arith.truncf %3 : vector<8x32xf32> to vector<8x32xbf16>
    %c0_8 = arith.constant 0 : index
    %c0_9 = arith.constant 0 : index
    %c0_10 = arith.constant 0 : index
    %15 = vector.load %arg3[%c0_8, %c0_9, %c0_10] : memref<1x32x96xbf16, #tpu.memory_space<vmem>>, vector<1x32x96xbf16>
    %16 = vector.shape_cast %15 : vector<1x32x96xbf16> to vector<32x96xbf16>
    %cst = arith.constant dense<0.000000e+00> : vector<8x96xf32>
    %17 = tpu.matmul %14, %16, %cst {dimension_numbers = #tpu.dot_dimension_numbers<[1], [0], [0], [1], [0, 0, 1, 1], [], []>} : vector<8x32xbf16>, vector<32x96xbf16>, vector<8x96xf32> -> vector<8x96xf32>
    %18 = vector.extract_strided_slice %17 {offsets = [0, 0], sizes = [8, 32], strides = [1, 1]} : vector<8x96xf32> to vector<8x32xf32>
    %cst_11 = arith.constant 0.176776692 : f32
    %19 = vector.broadcast %cst_11 : f32 to vector<8x32xf32>
    %20 = arith.mulf %18, %19 : vector<8x32xf32>
    %21 = vector.extract_strided_slice %17 {offsets = [0, 32], sizes = [8, 32], strides = [1, 1]} : vector<8x96xf32> to vector<8x32xf32>
    %22 = vector.extract_strided_slice %17 {offsets = [0, 64], sizes = [8, 32], strides = [1, 1]} : vector<8x96xf32> to vector<8x32xf32>
    %23 = vector.shape_cast %20 : vector<8x32xf32> to vector<1x8x4x8xf32>
    %24 = tpu.transpose %23, [0, 2, 1, 3] : vector<1x8x4x8xf32> -> vector<1x4x8x8xf32>
    %25 = vector.shape_cast %24 : vector<1x4x8x8xf32> to vector<4x8x8xf32>
    %26 = vector.shape_cast %21 : vector<8x32xf32> to vector<1x8x4x8xf32>
    %27 = tpu.transpose %26, [0, 2, 1, 3] : vector<1x8x4x8xf32> -> vector<1x4x8x8xf32>
    %28 = vector.shape_cast %27 : vector<1x4x8x8xf32> to vector<4x8x8xf32>
    %29 = vector.shape_cast %22 : vector<8x32xf32> to vector<1x8x4x8xf32>
    %30 = tpu.transpose %29, [0, 2, 1, 3] : vector<1x8x4x8xf32> -> vector<1x4x8x8xf32>
    %31 = vector.shape_cast %30 : vector<1x4x8x8xf32> to vector<4x8x8xf32>
    %32 = tpu.iota {dimensions = array<i32: 0>} : vector<8x8xi32>
    %33 = tpu.iota {dimensions = array<i32: 1>} : vector<8x8xi32>
    %34 = arith.cmpi sge, %32, %33 : vector<8x8xi32>
    %35 = arith.truncf %25 : vector<4x8x8xf32> to vector<4x8x8xbf16>
    %36 = arith.truncf %28 : vector<4x8x8xf32> to vector<4x8x8xbf16>
    "tpu.trace_start"() <{level = 10 : i32, message = "bqd,bkd->bqk"}> : () -> ()
    %cst_12 = arith.constant dense<0.000000e+00> : vector<4x8x8xf32>
    %37 = tpu.matmul %35, %36, %cst_12 {dimension_numbers = #tpu.dot_dimension_numbers<[2], [2], [1], [1], [0, 0, 0, 1, 1, 1], [0], [0]>} : vector<4x8x8xbf16>, vector<4x8x8xbf16>, vector<4x8x8xf32> -> vector<4x8x8xf32>
    %cst_13 = arith.constant 0xFF800000 : f32
    "tpu.trace_stop"() : () -> ()
    %38 = vector.shape_cast %34 : vector<8x8xi1> to vector<1x8x8xi1>
    %39 = vector.broadcast %38 : vector<1x8x8xi1> to vector<4x8x8xi1>
    %40 = vector.broadcast %cst_13 : f32 to vector<4x8x8xf32>
    %41 = arith.select %39, %37, %40 : vector<4x8x8xi1>, vector<4x8x8xf32>
    %cst_14 = arith.constant dense<0xFF800000> : vector<4x8xf32>
    %42 = vector.multi_reduction <maximumf>, %41, %cst_14 [2] : vector<4x8x8xf32> to vector<4x8xf32>
    %43 = vector.shape_cast %42 : vector<4x8xf32> to vector<4x8x1xf32>
    %44 = vector.broadcast %43 : vector<4x8x1xf32> to vector<4x8x8xf32>
    %45 = arith.subf %41, %44 : vector<4x8x8xf32>
    %46 = math.exp %45 : vector<4x8x8xf32>
    %cst_15 = arith.constant dense<0.000000e+00> : vector<4x8xf32>
    %47 = vector.multi_reduction <add>, %46, %cst_15 [2] : vector<4x8x8xf32> to vector<4x8xf32>
    %48 = vector.shape_cast %47 : vector<4x8xf32> to vector<4x8x1xf32>
    %49 = tpu.reciprocal %48 {approx = true} : vector<4x8x1xf32> -> vector<4x8x1xf32>
    %50 = arith.mulf %48, %49 : vector<4x8x1xf32>
    %cst_16 = arith.constant 2.000000e+00 : f32
    %51 = vector.broadcast %cst_16 : f32 to vector<4x8x1xf32>
    %52 = arith.subf %51, %50 : vector<4x8x1xf32>
    %53 = arith.mulf %49, %52 : vector<4x8x1xf32>
    %54 = arith.truncf %46 : vector<4x8x8xf32> to vector<4x8x8xbf16>
    %55 = arith.truncf %31 : vector<4x8x8xf32> to vector<4x8x8xbf16>
    "tpu.trace_start"() <{level = 10 : i32, message = "bqk,bkd->bqd"}> : () -> ()
    %cst_17 = arith.constant dense<0.000000e+00> : vector<4x8x8xf32>
    %56 = tpu.matmul %54, %55, %cst_17 {dimension_numbers = #tpu.dot_dimension_numbers<[2], [1], [1], [2], [0, 0, 0, 1, 1, 2], [0], [0]>} : vector<4x8x8xbf16>, vector<4x8x8xbf16>, vector<4x8x8xf32> -> vector<4x8x8xf32>
    "tpu.trace_stop"() : () -> ()
    %57 = vector.broadcast %53 : vector<4x8x1xf32> to vector<4x8x8xf32>
    %58 = arith.mulf %56, %57 : vector<4x8x8xf32>
    %59 = vector.shape_cast %58 : vector<4x8x8xf32> to vector<1x4x8x8xf32>
    %60 = tpu.transpose %59, [0, 2, 1, 3] : vector<1x4x8x8xf32> -> vector<1x8x4x8xf32>
    %61 = vector.shape_cast %60 : vector<1x8x4x8xf32> to vector<8x32xf32>
    %62 = arith.truncf %61 : vector<8x32xf32> to vector<8x32xbf16>
    %c0_18 = arith.constant 0 : index
    %c0_19 = arith.constant 0 : index
    %c0_20 = arith.constant 0 : index
    %63 = vector.load %arg4[%c0_18, %c0_19, %c0_20] : memref<1x32x32xbf16, #tpu.memory_space<vmem>>, vector<1x32x32xbf16>
    %64 = vector.shape_cast %63 : vector<1x32x32xbf16> to vector<32x32xbf16>
    %cst_21 = arith.constant dense<0.000000e+00> : vector<8x32xf32>
    %65 = tpu.matmul %62, %64, %cst_21 {dimension_numbers = #tpu.dot_dimension_numbers<[1], [0], [0], [1], [0, 0, 1, 1], [], []>} : vector<8x32xbf16>, vector<32x32xbf16>, vector<8x32xf32> -> vector<8x32xf32>
    %66 = vector.broadcast %6 : vector<1x32xf32> to vector<8x32xf32>
    %67 = arith.addf %65, %66 : vector<8x32xf32>
    %68 = arith.addf %67, %3 : vector<8x32xf32>
    %cst_22 = arith.constant dense<0.000000e+00> : vector<8xf32>
    %69 = vector.multi_reduction <add>, %68, %cst_22 [1] : vector<8x32xf32> to vector<8xf32>
    %70 = vector.shape_cast %69 : vector<8xf32> to vector<8x1xf32>
    %cst_23 = arith.constant 3.200000e+01 : f32
    %71 = vector.broadcast %cst_23 : f32 to vector<8x1xf32>
    %72 = arith.divf %70, %71 : vector<8x1xf32>
    %73 = vector.broadcast %72 : vector<8x1xf32> to vector<8x32xf32>
    %74 = arith.subf %68, %73 : vector<8x32xf32>
    %75 = arith.mulf %74, %74 : vector<8x32xf32>
    %cst_24 = arith.constant dense<0.000000e+00> : vector<8xf32>
    %76 = vector.multi_reduction <add>, %75, %cst_24 [1] : vector<8x32xf32> to vector<8xf32>
    %77 = vector.shape_cast %76 : vector<8xf32> to vector<8x1xf32>
    %cst_25 = arith.constant 3.200000e+01 : f32
    %78 = vector.broadcast %cst_25 : f32 to vector<8x1xf32>
    %79 = arith.divf %77, %78 : vector<8x1xf32>
    %80 = vector.broadcast %72 : vector<8x1xf32> to vector<8x32xf32>
    %81 = arith.subf %68, %80 : vector<8x32xf32>
    %cst_26 = arith.constant 9.99999974E-6 : f32
    %82 = vector.broadcast %cst_26 : f32 to vector<8x1xf32>
    %83 = arith.addf %79, %82 : vector<8x1xf32>
    %84 = math.rsqrt %83 : vector<8x1xf32>
    %85 = vector.broadcast %84 : vector<8x1xf32> to vector<8x32xf32>
    %86 = arith.mulf %81, %85 : vector<8x32xf32>
    %87 = vector.broadcast %8 : vector<1x32xf32> to vector<8x32xf32>
    %88 = arith.mulf %86, %87 : vector<8x32xf32>
    %89 = vector.broadcast %9 : vector<1x32xf32> to vector<8x32xf32>
    %90 = arith.addf %88, %89 : vector<8x32xf32>
    %91 = arith.truncf %90 : vector<8x32xf32> to vector<8x32xbf16>
    %c0_27 = arith.constant 0 : index
    %c0_28 = arith.constant 0 : index
    %c0_29 = arith.constant 0 : index
    %92 = vector.load %arg5[%c0_27, %c0_28, %c0_29] : memref<1x32x64xbf16, #tpu.memory_space<vmem>>, vector<1x32x64xbf16>
    %93 = vector.shape_cast %92 : vector<1x32x64xbf16> to vector<32x64xbf16>
    %cst_30 = arith.constant dense<0.000000e+00> : vector<8x64xf32>
    %94 = tpu.matmul %91, %93, %cst_30 {dimension_numbers = #tpu.dot_dimension_numbers<[1], [0], [0], [1], [0, 0, 1, 1], [], []>} : vector<8x32xbf16>, vector<32x64xbf16>, vector<8x64xf32> -> vector<8x64xf32>
    %95 = vector.broadcast %13 : vector<1x64xf32> to vector<8x64xf32>
    %96 = arith.addf %94, %95 : vector<8x64xf32>
    %cst_31 = arith.constant 0.000000e+00 : f32
    %97 = vector.broadcast %cst_31 : f32 to vector<8x64xf32>
    %98 = arith.maximumf %96, %97 : vector<8x64xf32>
    %99 = arith.truncf %98 : vector<8x64xf32> to vector<8x64xbf16>
    %c0_32 = arith.constant 0 : index
    %c0_33 = arith.constant 0 : index
    %c0_34 = arith.constant 0 : index
    %100 = vector.load %arg6[%c0_32, %c0_33, %c0_34] : memref<1x64x32xbf16, #tpu.memory_space<vmem>>, vector<1x64x32xbf16>
    %101 = vector.shape_cast %100 : vector<1x64x32xbf16> to vector<64x32xbf16>
    %cst_35 = arith.constant dense<0.000000e+00> : vector<8x32xf32>
    %102 = tpu.matmul %99, %101, %cst_35 {dimension_numbers = #tpu.dot_dimension_numbers<[1], [0], [0], [1], [0, 0, 1, 1], [], []>} : vector<8x64xbf16>, vector<64x32xbf16>, vector<8x32xf32> -> vector<8x32xf32>
    %103 = vector.broadcast %7 : vector<1x32xf32> to vector<8x32xf32>
    %104 = arith.addf %102, %103 : vector<8x32xf32>
    %105 = arith.addf %104, %3 : vector<8x32xf32>
    %cst_36 = arith.constant dense<0.000000e+00> : vector<8xf32>
    %106 = vector.multi_reduction <add>, %105, %cst_36 [1] : vector<8x32xf32> to vector<8xf32>
    %107 = vector.shape_cast %106 : vector<8xf32> to vector<8x1xf32>
    %cst_37 = arith.constant 3.200000e+01 : f32
    %108 = vector.broadcast %cst_37 : f32 to vector<8x1xf32>
    %109 = arith.divf %107, %108 : vector<8x1xf32>
    %110 = vector.broadcast %109 : vector<8x1xf32> to vector<8x32xf32>
    %111 = arith.subf %105, %110 : vector<8x32xf32>
    %112 = arith.mulf %111, %111 : vector<8x32xf32>
    %cst_38 = arith.constant dense<0.000000e+00> : vector<8xf32>
    %113 = vector.multi_reduction <add>, %112, %cst_38 [1] : vector<8x32xf32> to vector<8xf32>
    %114 = vector.shape_cast %113 : vector<8xf32> to vector<8x1xf32>
    %cst_39 = arith.constant 3.200000e+01 : f32
    %115 = vector.broadcast %cst_39 : f32 to vector<8x1xf32>
    %116 = arith.divf %114, %115 : vector<8x1xf32>
    %117 = vector.broadcast %109 : vector<8x1xf32> to vector<8x32xf32>
    %118 = arith.subf %105, %117 : vector<8x32xf32>
    %cst_40 = arith.constant 9.99999974E-6 : f32
    %119 = vector.broadcast %cst_40 : f32 to vector<8x1xf32>
    %120 = arith.addf %116, %119 : vector<8x1xf32>
    %121 = math.rsqrt %120 : vector<8x1xf32>
    %122 = vector.broadcast %121 : vector<8x1xf32> to vector<8x32xf32>
    %123 = arith.mulf %118, %122 : vector<8x32xf32>
    %124 = vector.broadcast %10 : vector<1x32xf32> to vector<8x32xf32>
    %125 = arith.mulf %123, %124 : vector<8x32xf32>
    %126 = vector.broadcast %11 : vector<1x32xf32> to vector<8x32xf32>
    %127 = arith.addf %125, %126 : vector<8x32xf32>
    %c0_41 = arith.constant 0 : index
    %c0_42 = arith.constant 0 : index
    %128 = vector.load %arg10[%c0_41, %c0_42] : memref<8x32xf32, #tpu.memory_space<vmem>>, vector<8x32xf32>
    tpu.vector_store %arg10[%c0_41, %c0_42], %127 {strides = array<i32>} : memref<8x32xf32, #tpu.memory_space<vmem>>, vector<8x32xf32>,
    %c1_i32 = arith.constant 1 : i32
    %129 = arith.cmpi eq, %arg1, %c1_i32 : i32
    %130 = arith.extui %129 : i1 to i32
    %c0_i32_43 = arith.constant 0 : i32
    %131 = arith.cmpi ne, %130, %c0_i32_43 : i32
    scf.if %131 {
      %c0_44 = arith.constant 0 : index
      %c0_45 = arith.constant 0 : index
      %132 = vector.load %arg9[%c0_44, %c0_45] : memref<8x32xf32, #tpu.memory_space<vmem>>, vector<8x32xf32>
      tpu.vector_store %arg9[%c0_44, %c0_45], %127 {strides = array<i32>} : memref<8x32xf32, #tpu.memory_space<vmem>>, vector<8x32xf32>,
    } else {
    }
    return
  }
  func.func @transform_0(%arg0: i32, %arg1: i32) -> (i32, i32) {
    %c0_i32 = arith.constant 0 : i32
    %c0_i32_0 = arith.constant 0 : i32
    return %arg0, %c0_i32 : i32, i32
  }
  func.func @transform_1(%arg0: i32, %arg1: i32) -> (i32, i32, i32) {
    %c0_i32 = arith.constant 0 : i32
    %c0_i32_0 = arith.constant 0 : i32
    %c0_i32_1 = arith.constant 0 : i32
    return %arg1, %c0_i32, %c0_i32_0 : i32, i32, i32
  }
  func.func @transform_2(%arg0: i32, %arg1: i32) -> (i32, i32, i32) {
    %c0_i32 = arith.constant 0 : i32
    %c0_i32_0 = arith.constant 0 : i32
    %c0_i32_1 = arith.constant 0 : i32
    return %arg1, %c0_i32, %c0_i32_0 : i32, i32, i32
  }
  func.func @transform_3(%arg0: i32, %arg1: i32) -> (i32, i32, i32) {
    %c0_i32 = arith.constant 0 : i32
    %c0_i32_0 = arith.constant 0 : i32
    %c0_i32_1 = arith.constant 0 : i32
    return %arg1, %c0_i32, %c0_i32_0 : i32, i32, i32
  }
  func.func @transform_4(%arg0: i32, %arg1: i32) -> (i32, i32, i32) {
    %c0_i32 = arith.constant 0 : i32
    %c0_i32_0 = arith.constant 0 : i32
    %c0_i32_1 = arith.constant 0 : i32
    return %arg1, %c0_i32, %c0_i32_0 : i32, i32, i32
  }
  func.func @transform_5(%arg0: i32, %arg1: i32) -> (i32, i32, i32) {
    %c0_i32 = arith.constant 0 : i32
    %c0_i32_0 = arith.constant 0 : i32
    %c0_i32_1 = arith.constant 0 : i32
    return %arg1, %c0_i32, %c0_i32_0 : i32, i32, i32
  }
  func.func @transform_6(%arg0: i32, %arg1: i32) -> (i32, i32, i32) {
    %c0_i32 = arith.constant 0 : i32
    %c0_i32_0 = arith.constant 0 : i32
    %c0_i32_1 = arith.constant 0 : i32
    return %arg1, %c0_i32, %c0_i32_0 : i32, i32, i32
  }
  func.func @transform_7(%arg0: i32, %arg1: i32) -> (i32, i32) {
    %c0_i32 = arith.constant 0 : i32
    %c0_i32_0 = arith.constant 0 : i32
    return %arg0, %c0_i32 : i32, i32
  }
}

</mosaic_0001>

<bundles_post_ra>
// kernel: tpu_custom_call.1
= control target key start
LH: loop header
LB: loop body
LE: loop exit
PB: predicated region body
PF: predicated region fallthrough
CT: control target
= control target key end

     0   :  { %s2854_s0 = inlined_call_operand.hbm [shape: f32[16,32], index: 0, kind: input, shape index: {}]   ;;  %s2855_s1 = inlined_call_operand.vmem [shape: bf16[2,32,96], index: 1, kind: input, shape index: {}]   ;;  %s2856_s2 = inlined_call_operand.vmem [shape: bf16[2,32,32], index: 2, kind: input, shape index: {}]   ;;  %s2857_s3 = inlined_call_operand.vmem [shape: bf16[2,32,64], index: 3, kind: input, shape index: {}]   ;;  %s2858_s4 = inlined_call_operand.vmem [shape: bf16[2,64,32], index: 4, kind: input, shape index: {}]   ;;  %s2859_s5 = inlined_call_operand.vmem [shape: f32[2,6,32], index: 5, kind: input, shape index: {}]   ;;  %s2860_s6 = inlined_call_operand.vmem [shape: f32[2,1,64], index: 6, kind: input, shape index: {}]   ;;  %s2861_s7 = inlined_call_operand.hbm [shape: f32[16,32], index: 7, kind: output, shape index: {}]  }
   0x1   :  { %2871 = sst [smem:[#allocation19_spill]] %s2854_s0 }
   0x2   :  { %2872 = sst [smem:[#allocation20_spill]] %s2855_s1 }
   0x3   :  { %12 = vsyncpa [#allocation4], 0 }
   0x4   :  { %14 = vsyncpa [#allocation4 + $0x1], 0 }
   0x5   :  { %15 = vsyncpa [#allocation5], 0 }
   0x6   :  { %17 = vsyncpa [#allocation5 + $0x1], 0  ;;  %s2449_s24 = smov 0   ;;  %s2451_s25 = smov 0  }
   0x7   :  { %s2453_s26 = smov 0   ;;  %s2455_s27 = smov 0  }
   0x8   :  { %s2457_s28 = smov 0   ;;  %s2459_s29 = smov 0  }
   0x9   :  { %s2461_s30 = smov 0   ;;  %s2463_s8 = smov 0  }
   0xa LB: > { %2873 = sst [smem:[#allocation9_spill]] %s2365_s24  ;;  %s1976_s9 = sadd.s32 4294967295, %s2393_s8   ;;  %s2393_s8 = sphi %s2463_s8, %s23_s8   ;;  %s2389_s30 = sphi %s2461_s30, %s2900_s30   ;;  %s2385_s29 = sphi %s2459_s29, %s2899_s29   ;;  %s2381_s28 = sphi %s2457_s28, %s2898_s28   ;;  %s2377_s27 = sphi %s2455_s27, %s2897_s27   ;;  %s2373_s26 = sphi %s2453_s26, %s2896_s26   ;;  %s2369_s25 = sphi %s2451_s25, %s2895_s25   ;;  %s2365_s24 = sphi %s2449_s24, %s2894_s24  }
   0xb   : > { %2874 = sst [smem:[#allocation10_spill]] %s2369_s25  ;;  %s1977_s10 = sadd.s32 4294967294, %s2393_s8  }
   0xc   : > { %2875 = sst [smem:[#allocation11_spill]] %s2373_s26  ;;  %s32_s11 = sadd.s32 1, %s2385_s29 }
   0xd   : > { %2876 = sst [smem:[#allocation12_spill]] %s2385_s29  ;;  %s35_s12 = sadd.s32 1, %s2389_s30 }
   0xe   : > { %2877 = sst [smem:[#allocation13_spill]] %s2389_s30  ;;  %p33_p0 = scmp.ge.s32.totalorder %s32_s11, 2 }
   0xf   : > { %2878 = sst [smem:[#allocation14_spill]] %s2393_s8  ;;  %s42_s13 = sadd.s32 1, %s2373_s26 }
  0x10   : > { %p49_p1 = scmp.ne.s32.totalorder %s2373_s26, %s2369_s25  ;;  %p50_p2 = scmp.eq.s32.totalorder %s2393_s8, 0 }
  0x11   : > { %s2902_s11 = smov (%p33_p0, %s32_s11), 0  ;;  %s2904_s12 = smov (!%p33_p0, %s35_s12), %s2389_s30 }
  0x12   : > { %2879 = sst [smem:[#allocation15_spill]] %s2902_s11  ;;  %p2500_p3 = por %p50_p2, %p49_p1 }
  0x13   : > { %p55_p4 = scmp.ne.s32.totalorder %s2369_s25, %s2365_s24  ;;  %p37_p5 = scmp.ge.s32.totalorder %s2904_s12, 2 }
  0x14   : > { %p56_p6 = scmp.eq.s32.totalorder %s1976_s9, 0  ;;  %p235_p7 = scmp.eq.s32.totalorder %s1976_s9, 3 }
  0x15   : > { %p241_p8 = scmp.eq.s32.totalorder %s1977_s10, 3  ;;  %s2906_s12 = smov (%p37_p5, %s2904_s12), 0 }
  0x16   : > { %2881 = sst [smem:[#allocation16_spill]] %s2906_s12  ;;  %p2508_p9 = por %p56_p6, %p55_p4 }
  0x17   : > { %p2512_p10 = por %p235_p7, %p49_p1  ;;  %s39_s17 = ssub.s32 %s2389_s30, %s2906_s12 }
  0x18   : > { %p2518_p11 = por %p241_p8, %p55_p4  ;;  %p40_p12 = scmp.eq.s32.totalorder %s39_s17, 0 }
  0x19   : > { %p2161_p13 = scmp.lt.s32.totalorder %s2393_s8, 4  ;;  %s261_s19 = sand.u32 1, %s2373_s26  }
  0x1a   : > { %s2884_s18 = scalar_select %p2518_p11, 1, 0 }
  0x1b   : > { %s2525_s20 = scalar_select %p40_p12, %s2373_s26, %s42_s13  }
  0x1c   : > { %2885 = sst [smem:[#allocation17_spill]] %s2884_s18  ;;  %s1980_s21 = sshll.u32 %s261_s19, 3 }
  0x1d   : > { %2886 = sst [smem:[#allocation18_spill]] %s2525_s20  ;;  %s1981_s22 = sshll.u32 %s2389_s30, 7 }
  0x1e   : > { %s2887_s0 = sld [smem:[#allocation19_spill]]  ;;  %s265_s11 = scalar_lea.vmem [#allocation3], %s1980_s21 }
  0x1f   : > { %s272_s29 = sshll.u32 %s265_s11, 4  ;;  %p2533_p0 = pnand %p2161_p13, %p2500_p3  ;;  %s273_s29 = int_to_ptr.vmem [resolvable:$true] %s272_s29 }
  0x20   : > { %p1982_p1 = scmp.ge.s32.totalorder %s2393_s8, 1  ;;  %p322_p2 = scmp.lt.s32.totalorder %s2393_s8, 5 }
  0x21   : > { %s262_s17 = scalar_lea.sflag [#allocation4], %s261_s19  ;;  %p2271_p4 = pneg %p2533_p0 }
  0x22   : > { %s2282_s13 = scalar_lea.vmem %s273_s29, 128  ;;  %s2395_s23 = smov [#allocation3]  }
  0x23   : > { %p2283_p5 = scmp.ne.s32.totalorder %s273_s29, %s2282_s13 }
  0x24   : > { %s270_s10 = scalar_lea.hbm %s2887_s0, %s1981_s22  ;;  %s2287_s22 = sshll.u32 %s2395_s23, 4  ;;  %s2288_s22 = int_to_ptr.vmem [resolvable:$false] %s2287_s22 }
  0x25   : > { %p2285_p6 = pnand %p2283_p5, %p2271_p4  ;;  %s2289_s11 = scalar_lea.vmem %s2288_s22, 256 }
  0x26   : > { %p2290_p8 = scmp.lt.s32.totalorder %s273_s29, %s2288_s22  ;;  %p2291_p12 = scmp.lt.s32.totalorder %s2289_s11, %s2282_s13 }
  0x27   : > { %p2286_p7 = pneg %p2285_p6 }
  0x28   : > { %p2292_p3 = por %p2291_p12, %p2290_p8 }
  0x2a   : > { %p2293_p13 = pnand %p2292_p3, %p2286_p7 }
  0x2c   : > { %2296 = shalt.err (!%p2293_p13)
}
  0x2d   : > { %2156 = dma.hbm_to_vmem [thread:$0]  (!%p2533_p0), %s270_s10, 128, %s273_s29, %s262_s17  }
  0x2e   : > { %p323_p11 = pnand %p1982_p1, %p322_p2 }
  0x2f   : > { %s2548_s14 = sand.u32 (!%p323_p11), 1, %s2369_s25  }
  0x30   : > { %326 = sbr.rel (%p323_p11) target bundleno = 2512 (0x9d0), region = 48  ;;  %s1983_s19 = sshll.u32 (!%p323_p11), %s2548_s14, 3 }
  0x31   : > { %s329_s21 = scalar_lea.sflag (!%p323_p11), [#allocation4], %s2548_s14  ;;  %s332_s9 = scalar_lea.vmem (!%p323_p11), [#allocation3], %s1983_s19 }
  0x35   : > { %2356 = dma.done.wait (%p2508_p9), %s329_s21, 128  }
  0x36   : > { %2358 = vsyncadd (%p2508_p9), %s329_s21, 4294967168  ;;  %p390_p0 = scmp.lt.s32.totalorder %s2377_s27, 1  ;;  %s2889_s1 = sld [smem:[#allocation20_spill]] }
  0x37   : > { %s2590_s11 = scalar_lea.vmem [#allocation6], %s1983_s19  ;;  %p1994_p9 = scmp.ne.s32.totalorder %s2377_s27, 0 }
  0x38   : > { %s2558_s29 = scalar_select %p390_p0, %s2377_s27, 1 }
  0x3a   : > { %s2031_s12 = sshll.u32 %s2558_s29, 4  ;;  %s2034_s10 = sshll.u32 %s2558_s29, 5 }
  0x3b   : > { %s2568_s15 = scalar_lea.vmem %s2856_s2, %s2031_s12  ;;  %s2573_s30 = scalar_lea.vmem %s2857_s3, %s2031_s12 }
  0x3c   : > { %s394_s23 = scalar_lea.vmem %s2889_s1, %s2031_s12  ;;  %s2578_s25 = scalar_lea.vmem %s2858_s4, %s2034_s10 }
  0x3d   : > { %s1993_s18 = sshll.u32 %s2558_s29, 3  ;;  %s416_s17 = scalar_lea.vmem %s2860_s6, %s2558_s29 }
  0x3e   : > { %s2588_s22 = scalar_lea.vmem %s2859_s5, %s1993_s18  ;;  %421 = sbr.rel (%p1994_p9) target bundleno = 69 (0x45), region = 56 }
  0x43   : > { %v422_v0 = vld [vmem:[%s332_s9] sm:$0xff]  ;;  %vm423_vm0 = vcmask 261120  }
  0x44   : > { %424 = vst.msk [vmem:[#allocation2] sm:$0xff] %vm423_vm0, %v422_v0 }
  0x45 PF: > { %v2239_v1 = vld [vmem:[%s394_s23 + $0x8] sm:$0xff]   ;;  %v2396_v2 = vmov 0.0   ;;  %v2240_v3 = vld [vmem:[%s394_s23] sm:$0xff]   ;;  %vm2397_vm1 = vmmov 0   ;;  %vm445_vm2 = vcmask 261120   ;;  %s2398_s0 = smov 104   ;;  %v505_v16 = vlaneseq }
  0x46   : > { %2065 = vmatprep.subr.bf16.mxu0 %v2396_v2  ;;  %2073 = vmatprep.subr.bf16.mxu1 %v2396_v2  ;;  %s2399_s1 = smov 120   ;;  %s2400_s24 = smov 96   ;;  %v2403_v14 = vmov 1983009808   ;;  %v2404_v17 = vmov 1934713408  }
  0x47   : > { %2066 = vmatpush3.bf16.msra.mxu0 %v2239_v1  ;;  %2069 = vmatprep.mubr.msk.bf16.mxu0 %vm2397_vm1, %v2396_v2  ;;  %s2401_s26 = smov 112   ;;  %s2402_s8 = smov 64   ;;  %v503_v15 = vunpack.c.l.s4 %v2403_v14  ;;  %v535_v18 = vunpack.c.l.s4 %v2404_v17  ;;  %v2617_v20 = vshrl.u32 %v505_v16, 7  ;;  %vm952_vm3 = vcmask 64512  }
  0x48   : > { %2067 = vmatprep.subr.bf16.mxu0 %v2396_v2  ;;  %2075 = vmatprep.mubr.msk.bf16.mxu1 %vm2397_vm1, %v2396_v2  ;;  %vm1206_vm5 = vcmask 1043456   ;;  %s2405_s18 = smov 16   ;;  %s2406_s20 = smov 8   ;;  %vm1541_vm6 = vcmask 130048   ;;  %vm1543_vm7 = vcmask 195584   ;;  %vm1738_vm8 = vcmask 523264  }
  0x49   : > { %v504_v19 = vunpack.c.0.s8 %v503_v15  ;;  %v536_v23 = vunpack.c.0.s8 %v535_v18  ;;  %s2407_s19 = smov 24   ;;  %p2026_p11 = scmp.ne.s32.totalorder %s2377_s27, 1 }
  0x4b   : > { %v2597_v4 = vld [vmem:[#allocation2] sm:$0xff]  ;;  %2068 = vmatpush3.bf16.msra.mxu0 %v2240_v3  ;;  %v2620_v24 = vsub.s32 %v504_v19, %v2617_v20  ;;  %v2623_v31 = vsub.s32 %v536_v23, %v2617_v20 }
  0x4c   : > { %v428_v5 = vpack.c.bf16 %v2597_v4, %v2597_v4  ;;  %2079 = vmatprep.subr.bf16.mxu0 %v2396_v2 }
  0x4e   : > { %2070 = vmatmul.mubr.msk.bf16.vlgmr.msra.gmra.mxu0 %vm445_vm2, %v428_v5 }
  0x4f   : > { %2081 = vmatprep.mubr.msk.bf16.mxu0 %vm2397_vm1, %v2396_v2 }
 0x10e   : > { %v483_v6 = vpop.f32.mrf.mxu0 }
 0x10f   : > { %641 = vrot.lane.b32.xlu1 %v483_v6, %s2398_s0  ;;  %637 = vrot.lane.b32.xlu0 %v483_v6, %s2399_s1  ;;  %v489_v13 = vmul.f32 0.17677669, %v483_v6 }
 0x110   : > { %v2071_v7 = vpop.f32.mrf.mxu0 }
 0x112   : > { %v486_v8 = vpop.f32.mrf.mxu0 }
 0x113   : > { %643 = vrot.lane.b32.xlu1 %v483_v6, %s2400_s24  ;;  %639 = vrot.lane.b32.xlu0 %v483_v6, %s2401_s26 }
 0x114   : > { %v2072_v9 = vpop.f32.mrf.mxu0 }
 0x181   : > { %v638_v10 = vpop.permute.xlu0 %637  ;;  %v2608_v11 = vpop.permute.xlu1 %641 }
 0x182   : > { %645 = vrot.lane.b32.xlu0 %v638_v10, %s2400_s24 }
 0x185   : > { %v2610_v12 = vpop.permute.xlu0 %639  ;;  %v644_v21 = vpop.permute.xlu1 %643 }
 0x186   : > { %649 = vrot.lane.b32.xlu0 %v2608_v11, %s2400_s24  ;;  %647 = vrot.lane.b32.xlu1 %v2610_v12, %s2400_s24 }
 0x18a   : > { %494 = vrot.lane.b32.xlu0 %v489_v13, %s2401_s26  ;;  %491 = vrot.lane.b32.xlu1 %v489_v13, %s2399_s1 }
 0x18e   : > { %791 = vrot.lane.b32.xlu0 %v483_v6, %s2402_s8  ;;  %497 = vrot.lane.b32.xlu1 %v489_v13, %s2398_s0 }
 0x192   : > { %793 = vrot.lane.b32.xlu1 %v638_v10, %s2402_s8 }
 0x1f4   : > { %v646_v22 = vpop.permute.xlu0 %645 }
 0x1f8   : > { %v648_v25 = vpop.permute.xlu1 %647  ;;  %v650_v26 = vpop.permute.xlu0 %649 }
 0x1f9   : > { %v655_v27 = vcombine.low %v644_v21, %v648_v25  ;;  %v656_v28 = vcombine.high %v644_v21, %v648_v25  ;;  %v671_v29 = vcombine.low %v646_v22, %v650_v26  ;;  %v672_v30 = vcombine.high %v646_v22, %v650_v26 }
 0x1fb   : > { %v663_v32 = vrot.slane %v655_v27, %v2620_v24  ;;  %v670_v33 = vrot.slane %v656_v28, %v2620_v24  ;;  %v679_v34 = vrot.slane %v671_v29, %v2620_v24  ;;  %v686_v35 = vrot.slane %v672_v30, %v2620_v24 }
 0x1fc   : > { %v492_v36 = vpop.permute.xlu1 %491  ;;  %v495_v41 = vpop.permute.xlu0 %494 }
 0x1fd   : > { %v687_v37 = vcombine.low %v663_v32, %v679_v34  ;;  %v688_v38 = vcombine.high %v663_v32, %v679_v34  ;;  %v703_v39 = vcombine.low %v670_v33, %v686_v35  ;;  %v704_v40 = vcombine.high %v670_v33, %v686_v35 }
 0x1fe   : > { %v500_v46 = vcombine.low %v489_v13, %v495_v41  ;;  %v501_v47 = vcombine.high %v489_v13, %v495_v41 }
 0x1ff   : > { %v695_v42 = vrot.slane %v687_v37, %v2623_v31  ;;  %v702_v43 = vrot.slane %v688_v38, %v2623_v31  ;;  %v711_v44 = vrot.slane %v703_v39, %v2623_v31  ;;  %v718_v45 = vrot.slane %v704_v40, %v2623_v31 }
 0x200   : > { %v498_v48 = vpop.permute.xlu1 %497  ;;  %v508_v59 = vrot.slane %v500_v46, %v2620_v24  ;;  %v515_v60 = vrot.slane %v501_v47, %v2620_v24 }
 0x201   : > { %v723_v49 = vcombine.low %v695_v42, %v702_v43  ;;  %v2000_v50 = vcombine.high %v695_v42, %v702_v43  ;;  %v739_v51 = vcombine.low %v711_v44, %v718_v45  ;;  %v2001_v52 = vcombine.high %v711_v44, %v718_v45 }
 0x202   : > { %v516_v53 = vcombine.low %v492_v36, %v498_v48  ;;  %v517_v54 = vcombine.high %v492_v36, %v498_v48 }
 0x203   : > { %v730_v55 = vrot.slane %v723_v49, %v2620_v24  ;;  %v738_v56 = vrot.slane %v2000_v50, %v2620_v24  ;;  %v746_v57 = vrot.slane %v739_v51, %v2620_v24  ;;  %v754_v58 = vrot.slane %v2001_v52, %v2620_v24 }
 0x204   : > { %v524_v61 = vrot.slane %v516_v53, %v2620_v24  ;;  %v531_v62 = vrot.slane %v517_v54, %v2620_v24 }
 0x205   : > { %v755_v63 = vcombine.low %v730_v55, %v738_v56  ;;  %v771_v0 = vcombine.low %v746_v57, %v754_v58  ;;  %v756_v9 = vcombine.high %v730_v55, %v738_v56  ;;  %v772_v10 = vcombine.high %v746_v57, %v754_v58 }
 0x206   : > { %v532_v1 = vcombine.low %v508_v59, %v524_v61  ;;  %v533_v3 = vcombine.high %v508_v59, %v524_v61  ;;  %v548_v5 = vcombine.low %v515_v60, %v531_v62  ;;  %v549_v6 = vcombine.high %v515_v60, %v531_v62 }
 0x207   : > { %v763_v7 = vrot.slane %v755_v63, %v2623_v31  ;;  %v779_v8 = vrot.slane %v771_v0, %v2623_v31  ;;  %v770_v28 = vrot.slane %v756_v9, %v2623_v31  ;;  %v786_v29 = vrot.slane %v772_v10, %v2623_v31 }
 0x208   : > { %v540_v13 = vrot.slane %v532_v1, %v2623_v31  ;;  %v547_v14 = vrot.slane %v533_v3, %v2623_v31  ;;  %v556_v15 = vrot.slane %v548_v5, %v2623_v31  ;;  %v563_v17 = vrot.slane %v549_v6, %v2623_v31 }
 0x209   : > { %v787_v18 = vcombine.low %v763_v7, %v779_v8  ;;  %v788_v19 = vcombine.high %v763_v7, %v779_v8  ;;  %v789_v39 = vcombine.low %v770_v28, %v786_v29  ;;  %v790_v40 = vcombine.high %v770_v28, %v786_v29 }
 0x20a   : > { %v568_v21 = vcombine.low %v540_v13, %v547_v14  ;;  %v1998_v22 = vcombine.high %v540_v13, %v547_v14  ;;  %v584_v23 = vcombine.low %v556_v15, %v563_v17  ;;  %v1999_v25 = vcombine.high %v556_v15, %v563_v17 }
 0x20b   : > { %v948_v26 = vpack.c.bf16 %v787_v18, %v787_v18  ;;  %v949_v27 = vpack.c.bf16 %v788_v19, %v788_v19  ;;  %v950_v47 = vpack.c.bf16 %v789_v39, %v789_v39  ;;  %v951_v48 = vpack.c.bf16 %v790_v40, %v790_v40 }
 0x20c   : > { %v575_v30 = vrot.slane %v568_v21, %v2620_v24  ;;  %v583_v32 = vrot.slane %v1998_v22, %v2620_v24  ;;  %v591_v33 = vrot.slane %v584_v23, %v2620_v24  ;;  %v599_v34 = vrot.slane %v1999_v25, %v2620_v24 }
 0x20d   : > { %v957_v35 = vsel %vm952_vm3, %v948_v26, 0  ;;  %v1003_v36 = vsel %vm952_vm3, %v949_v27, 0  ;;  %v1049_v53 = vsel %vm952_vm3, %v950_v47, 0  ;;  %v1095_v54 = vsel %vm952_vm3, %v951_v48, 0  ;;  %v794_v26 = vpop.permute.xlu1 %793 }
 0x20e   : > { %2074 = vmatpush3.bf16.xpose.msra.mxu1 %v957_v35  ;;  %2080 = vmatpush3.bf16.xpose.msra.mxu0 %v1003_v36  ;;  %v600_v37 = vcombine.low %v575_v30, %v583_v32  ;;  %v616_v38 = vcombine.low %v591_v33, %v599_v34  ;;  %v601_v42 = vcombine.high %v575_v30, %v583_v32  ;;  %v942_v59 = vand.u32 127, %v505_v16 }
 0x20f   : > { %2085 = vmatprep.subr.bf16.mxu1 %v2396_v2  ;;  %2091 = vmatprep.subr.bf16.mxu0 %v2396_v2  ;;  %v617_v43 = vcombine.high %v591_v33, %v599_v34 }
 0x210   : > { %v608_v41 = vrot.slane %v600_v37, %v2623_v31  ;;  %v624_v44 = vrot.slane %v616_v38, %v2623_v31  ;;  %v615_v51 = vrot.slane %v601_v42, %v2623_v31  ;;  %vm943_vm4 = vcmp.ge.s32.totalorder %v2617_v20, %v942_v59 }
 0x211   : > { %v631_v52 = vrot.slane %v617_v43, %v2623_v31 }
 0x212   : > { %v632_v45 = vcombine.low %v608_v41, %v624_v44  ;;  %v633_v46 = vcombine.high %v608_v41, %v624_v44 }
 0x213   : > { %v634_v55 = vcombine.low %v615_v51, %v631_v52  ;;  %v635_v56 = vcombine.high %v615_v51, %v631_v52 }
 0x214   : > { %v944_v49 = vpack.c.bf16 %v632_v45, %v632_v45  ;;  %v945_v50 = vpack.c.bf16 %v633_v46, %v633_v46 }
 0x215   : > { %v946_v57 = vpack.c.bf16 %v634_v55, %v634_v55  ;;  %v947_v58 = vpack.c.bf16 %v635_v56, %v635_v56 }
 0x216   : > { %2076 = vmatmul.mubr.msk.bf16.vlgmr.msra.gmra.mxu1 %vm952_vm3, %v944_v49  ;;  %2082 = vmatmul.mubr.msk.bf16.vlgmr.msra.gmra.mxu0 %vm952_vm3, %v945_v50 }
 0x217   : > { %2086 = vmatpush3.bf16.xpose.msra.mxu1 %v1049_v53  ;;  %2092 = vmatpush3.bf16.xpose.msra.mxu0 %v1095_v54 }
 0x218   : > { %2087 = vmatprep.mubr.msk.bf16.mxu1 %vm2397_vm1, %v2396_v2  ;;  %2093 = vmatprep.mubr.msk.bf16.mxu0 %vm2397_vm1, %v2396_v2 }
 0x219   : > { %2097 = vmatprep.subr.bf16.mxu1 %v2396_v2  ;;  %2103 = vmatprep.subr.bf16.mxu0 %v2396_v2 }
 0x21e   : > { %2088 = vmatmul.mubr.msk.bf16.vlgmr.msra.gmra.mxu1 %vm952_vm3, %v946_v57  ;;  %2094 = vmatmul.mubr.msk.bf16.vlgmr.msra.gmra.mxu0 %vm952_vm3, %v947_v58 }
 0x21f   : > { %2099 = vmatprep.mubr.msk.bf16.mxu1 %vm2397_vm1, %v2396_v2  ;;  %2105 = vmatprep.mubr.msk.bf16.mxu0 %vm2397_vm1, %v2396_v2 }
 0x2d6   : > { %v993_v60 = vpop.f32.mrf.mxu1  ;;  %v1039_v61 = vpop.f32.mrf.mxu0 }
 0x2d7   : > { %v1139_v62 = vsel %vm943_vm4, %v993_v60, -inf  ;;  %v1140_v63 = vsel %vm943_vm4, %v1039_v61, -inf }
 0x2d8   : > { %v2077_v0 = vpop.f32.mrf.mxu1  ;;  %v2083_v1 = vpop.f32.mrf.mxu0  ;;  %v1143_v3 = vsel %vm952_vm3, %v1139_v62, -inf  ;;  %v1146_v5 = vsel %vm952_vm3, %v1140_v63, -inf }
 0x2d9   : > { %1144 = vmax.xlane.f32.xlu0 %v1143_v3  ;;  %1147 = vmax.xlane.f32.xlu1 %v1146_v5 }
 0x2da   : > { %v996_v6 = vpop.f32.mrf.mxu1  ;;  %v1042_v16 = vpop.f32.mrf.mxu0 }
 0x2dc   : > { %v2078_v7 = vpop.f32.mrf.mxu1  ;;  %v2084_v8 = vpop.f32.mrf.mxu0 }
 0x2de   : > { %v1085_v9 = vpop.f32.mrf.mxu1  ;;  %v1131_v10 = vpop.f32.mrf.mxu0 }
 0x2df   : > { %v2691_v21 = vsel %vm943_vm4, %v1085_v9, -inf  ;;  %v2695_v22 = vsel %vm943_vm4, %v1131_v10, -inf }
 0x2e0   : > { %v2089_v13 = vpop.f32.mrf.mxu1  ;;  %v2095_v14 = vpop.f32.mrf.mxu0  ;;  %v1149_v23 = vsel %vm952_vm3, %v2691_v21, -inf  ;;  %v1152_v25 = vsel %vm952_vm3, %v2695_v22, -inf }
 0x2e2   : > { %v1088_v15 = vpop.f32.mrf.mxu1  ;;  %v1134_v17 = vpop.f32.mrf.mxu0 }
 0x2e4   : > { %v2090_v18 = vpop.f32.mrf.mxu1  ;;  %v2096_v19 = vpop.f32.mrf.mxu0 }
 0x2ea   : > { %797 = vrot.lane.b32.xlu1 %v2608_v11, %s2402_s8  ;;  %v792_v11 = vpop.permute.xlu0 %791 }
 0x2ef   : > { %795 = vrot.lane.b32.xlu0 %v2610_v12, %s2402_s8 }
 0x30e   : > { %1150 = vmax.xlane.f32.xlu0 %v1149_v23  ;;  %1153 = vmax.xlane.f32.xlu1 %v1152_v25 }
 0x362   : > { %v1145_v27 = vpop.xlane.xlu0 %1144  ;;  %v1148_v12 = vpop.xlane.xlu1 %1147 }
 0x363   : > { %v1155_v28 = vsub.f32 %v1139_v62, %v1145_v27  ;;  %v1156_v29 = vsub.f32 %v1140_v63, %v1148_v12 }
 0x365   : > { %v1159_v30 = vmul.f32 1.442695, %v1155_v28  ;;  %v1161_v32 = vmul.f32 1.442695, %v1156_v29 }
 0x366   : > { %v796_v33 = vpop.permute.xlu0 %795  ;;  %v798_v34 = vpop.permute.xlu1 %797 }
 0x367   : > { %2249 = vpow2.f32 %v1159_v30  ;;  %v803_v35 = vcombine.low %v792_v11, %v796_v33  ;;  %v804_v36 = vcombine.high %v792_v11, %v796_v33  ;;  %v819_v37 = vcombine.low %v794_v26, %v798_v34 }
 0x368   : > { %v820_v38 = vcombine.high %v794_v26, %v798_v34  ;;  %2251 = vpow2.f32 %v1161_v32 }
 0x369   : > { %v811_v39 = vrot.slane %v803_v35, %v2620_v24  ;;  %v818_v40 = vrot.slane %v804_v36, %v2620_v24  ;;  %v827_v41 = vrot.slane %v819_v37, %v2620_v24 }
 0x36a   : > { %v834_v42 = vrot.slane %v820_v38, %v2620_v24 }
 0x36b   : > { %v835_v43 = vcombine.low %v811_v39, %v827_v41  ;;  %v836_v44 = vcombine.high %v811_v39, %v827_v41 }
 0x36c   : > { %v851_v45 = vcombine.low %v818_v40, %v834_v42  ;;  %v852_v46 = vcombine.high %v818_v40, %v834_v42 }
 0x36d   : > { %v843_v47 = vrot.slane %v835_v43, %v2623_v31  ;;  %v850_v48 = vrot.slane %v836_v44, %v2623_v31 }
 0x36e   : > { %v859_v49 = vrot.slane %v851_v45, %v2623_v31  ;;  %v866_v50 = vrot.slane %v852_v46, %v2623_v31 }
 0x36f   : > { %v871_v51 = vcombine.low %v843_v47, %v850_v48  ;;  %v2002_v52 = vcombine.high %v843_v47, %v850_v48 }
 0x370   : > { %v887_v53 = vcombine.low %v859_v49, %v866_v50  ;;  %v2003_v54 = vcombine.high %v859_v49, %v866_v50 }
 0x371   : > { %v878_v55 = vrot.slane %v871_v51, %v2620_v24  ;;  %v886_v56 = vrot.slane %v2002_v52, %v2620_v24 }
 0x372   : > { %v894_v57 = vrot.slane %v887_v53, %v2620_v24  ;;  %v902_v58 = vrot.slane %v2003_v54, %v2620_v24 }
 0x373   : > { %v903_v59 = vcombine.low %v878_v55, %v886_v56  ;;  %v904_v60 = vcombine.high %v878_v55, %v886_v56 }
 0x374   : > { %v2250_v61 = vpop.eup %2249  ;;  %v919_v62 = vcombine.low %v894_v57, %v902_v58  ;;  %v920_v63 = vcombine.high %v894_v57, %v902_v58 }
 0x375   : > { %v1167_v0 = vsel %vm952_vm3, %v2250_v61, 0.0  ;;  %v911_v1 = vrot.slane %v903_v59, %v2623_v31  ;;  %v918_v3 = vrot.slane %v904_v60, %v2623_v31  ;;  %v2252_v5 = vpop.eup %2251  ;;  %v1195_v25 = vpack.c.bf16 %v2250_v61, %v2250_v61 }
 0x376   : > { %1168 = vadd.xlane.f32.xlu0 %v1167_v0  ;;  %v927_v6 = vrot.slane %v919_v62, %v2623_v31  ;;  %v934_v16 = vrot.slane %v920_v63, %v2623_v31  ;;  %v1170_v13 = vsel %vm952_vm3, %v2252_v5, 0.0  ;;  %v1196_v11 = vpack.c.bf16 %v2252_v5, %v2252_v5 }
 0x378   : > { %v935_v7 = vcombine.low %v911_v1, %v927_v6  ;;  %v936_v8 = vcombine.high %v911_v1, %v927_v6  ;;  %v937_v9 = vcombine.low %v918_v3, %v934_v16  ;;  %v938_v10 = vcombine.high %v918_v3, %v934_v16 }
 0x37a   : > { %1171 = vadd.xlane.f32.xlu0 %v1170_v13  ;;  %v1199_v14 = vpack.c.bf16 %v935_v7, %v935_v7  ;;  %v1200_v15 = vpack.c.bf16 %v936_v8, %v936_v8  ;;  %v1201_v19 = vpack.c.bf16 %v937_v9, %v937_v9  ;;  %v1202_v23 = vpack.c.bf16 %v938_v10, %v938_v10 }
 0x37c   : > { %v1208_v17 = vsel %vm1206_vm5, %v1199_v14, 0  ;;  %v1254_v18 = vsel %vm1206_vm5, %v1200_v15, 0  ;;  %v1300_v26 = vsel %vm1206_vm5, %v1201_v19, 0  ;;  %v1346_v27 = vsel %vm1206_vm5, %v1202_v23, 0 }
 0x37d   : > { %2098 = vmatpush3.bf16.msra.mxu1 %v1208_v17  ;;  %2104 = vmatpush3.bf16.msra.mxu0 %v1254_v18 }
 0x37e   : > { %2109 = vmatprep.subr.bf16.mxu1 %v2396_v2  ;;  %2115 = vmatprep.subr.bf16.mxu0 %v2396_v2 }
 0x380   : > { %2100 = vmatmul.mubr.msk.bf16.vlgmr.msra.gmra.mxu1 %vm952_vm3, %v1195_v25  ;;  %2106 = vmatmul.mubr.msk.bf16.vlgmr.msra.gmra.mxu0 %vm952_vm3, %v1196_v11 }
 0x381   : > { %2110 = vmatpush3.bf16.msra.mxu1 %v1300_v26  ;;  %2116 = vmatpush3.bf16.msra.mxu0 %v1346_v27 }
 0x382   : > { %2111 = vmatprep.mubr.msk.bf16.mxu1 %vm2397_vm1, %v2396_v2  ;;  %2117 = vmatprep.mubr.msk.bf16.mxu0 %vm2397_vm1, %v2396_v2 }
 0x383   : > { %2121 = vmatprep.subr.bf16.mxu1 %v2396_v2  ;;  %2129 = vmatprep.subr.bf16.mxu0 %v2396_v2 }
 0x397   : > { %v1151_v12 = vpop.xlane.xlu0 %1150  ;;  %v1154_v28 = vpop.xlane.xlu1 %1153 }
 0x398   : > { %v1157_v29 = vsub.f32 %v2691_v21, %v1151_v12  ;;  %v1158_v30 = vsub.f32 %v2695_v22, %v1154_v28  ;;  %v2241_v28 = vld [vmem:[%s2568_s15 + $0x8] sm:$0xff]  }
 0x39a   : > { %v1163_v32 = vmul.f32 1.442695, %v1157_v29  ;;  %v1165_v33 = vmul.f32 1.442695, %v1158_v30 }
 0x39c   : > { %2253 = vpow2.f32 %v1163_v32 }
 0x39d   : > { %2255 = vpow2.f32 %v1165_v33 }
 0x3a9   : > { %v2254_v34 = vpop.eup %2253 }
 0x3aa   : > { %v2256_v35 = vpop.eup %2255  ;;  %v1173_v36 = vsel %vm952_vm3, %v2254_v34, 0.0  ;;  %v1197_v37 = vpack.c.bf16 %v2254_v34, %v2254_v34 }
 0x3ab   : > { %1174 = vadd.xlane.f32.xlu1 %v1173_v36  ;;  %v1176_v38 = vsel %vm952_vm3, %v2256_v35, 0.0  ;;  %v1198_v39 = vpack.c.bf16 %v2256_v35, %v2256_v35 }
 0x3ac   : > { %1177 = vadd.xlane.f32.xlu0 %v1176_v38  ;;  %2112 = vmatmul.mubr.msk.bf16.vlgmr.msra.gmra.mxu1 %vm952_vm3, %v1197_v37  ;;  %v2242_v38 = vld [vmem:[%s2568_s15] sm:$0xff]  }
 0x3ad   : > { %2118 = vmatmul.mubr.msk.bf16.vlgmr.msra.gmra.mxu0 %vm952_vm3, %v1198_v39  ;;  %2125 = vmatprep.mubr.msk.bf16.mxu1 %vm2397_vm1, %v2396_v2 }
 0x3ae   : > { %2133 = vmatprep.mubr.msk.bf16.mxu0 %vm2397_vm1, %v2396_v2  ;;  %2122 = vmatpush3.bf16.msra.mxu1 %v2241_v28 }
 0x3af   : > { %2123 = vmatprep.subr.bf16.mxu1 %v2396_v2 }
 0x3b2   : > { %2124 = vmatpush3.bf16.msra.mxu1 %v2242_v38  ;;  %v2017_v38 = vld [vmem:[%s416_s17] ss:$0 sm:$0xff] }
 0x3b3   : > { %2137 = vmatprep.subr.bf16.mxu1 %v2396_v2 }
 0x3ff   : > { %v1169_v46 = vpop.xlane.xlu0 %1168 }
 0x400   : > { %2257 = vrcp.f32 %v1169_v46 }
 0x403   : > { %v1172_v47 = vpop.xlane.xlu0 %1171 }
 0x404   : > { %2259 = vrcp.f32 %v1172_v47 }
 0x40d   : > { %v2258_v50 = vpop.eup %2257 }
 0x40e   : > { %v1183_v54 = vmul.f32 %v2258_v50, %v1169_v46 }
 0x410   : > { %v1187_v58 = vsub.f32 2.0, %v1183_v54 }
 0x411   : > { %v2260_v51 = vpop.eup %2259 }
 0x412   : > { %v1184_v56 = vmul.f32 %v2260_v51, %v1172_v47  ;;  %v1191_v62 = vmul.f32 %v2258_v50, %v1187_v58 }
 0x414   : > { %v1188_v60 = vsub.f32 2.0, %v1184_v56 }
 0x416   : > { %v1192_v0 = vmul.f32 %v2260_v51, %v1188_v60 }
 0x434   : > { %v1175_v48 = vpop.xlane.xlu1 %1174 }
 0x435   : > { %v1178_v49 = vpop.xlane.xlu0 %1177  ;;  %2261 = vrcp.f32 %v1175_v48 }
 0x436   : > { %2263 = vrcp.f32 %v1178_v49 }
 0x440   : > { %v1244_v21 = vpop.f32.mrf.mxu1  ;;  %v1290_v22 = vpop.f32.mrf.mxu0 }
 0x441   : > { %v1388_v5 = vmul.f32 %v1244_v21, %v1191_v62  ;;  %v1389_v7 = vmul.f32 %v1290_v22, %v1192_v0  ;;  %v1552_v62 = vsub.s32 0, %v2617_v20 }
 0x442   : > { %v2101_v40 = vpop.f32.mrf.mxu1  ;;  %v2107_v41 = vpop.f32.mrf.mxu0 }
 0x443   : > { %v2262_v52 = vpop.eup %2261 }
 0x444   : > { %v1247_v42 = vpop.f32.mrf.mxu1  ;;  %v1293_v43 = vpop.f32.mrf.mxu0  ;;  %v1185_v55 = vmul.f32 %v2262_v52, %v1175_v48 }
 0x445   : > { %v2264_v53 = vpop.eup %2263 }
 0x446   : > { %v2102_v44 = vpop.f32.mrf.mxu1  ;;  %v2108_v45 = vpop.f32.mrf.mxu0  ;;  %v1186_v57 = vmul.f32 %v2264_v53, %v1178_v49  ;;  %v1189_v59 = vsub.f32 2.0, %v1185_v55 }
 0x448   : > { %v1190_v61 = vsub.f32 2.0, %v1186_v57  ;;  %v1193_v63 = vmul.f32 %v2262_v52, %v1189_v59 }
 0x44a   : > { %v1194_v3 = vmul.f32 %v2264_v53, %v1190_v61 }
 0x46c   : > { %v1336_v1 = vpop.f32.mrf.mxu1 }
 0x46d   : > { %v1390_v6 = vmul.f32 %v1336_v1, %v1193_v63  ;;  %v1382_v16 = vpop.f32.mrf.mxu0  ;;  %v2769_v63 = vld [vmem:[%s2588_s22] sm:$0x3f] }
 0x46e   : > { %v1391_v8 = vmul.f32 %v1382_v16, %v1194_v3  ;;  %v2113_v9 = vpop.f32.mrf.mxu1  ;;  %v1553_v0 = vrot.slane %v2769_v63, %v1552_v62 }
 0x46f   : > { %v1392_v10 = vcombine.low %v1388_v5, %v1390_v6  ;;  %v1393_v13 = vcombine.high %v1388_v5, %v1390_v6  ;;  %v2119_v14 = vpop.f32.mrf.mxu0 }
 0x470   : > { %v1408_v15 = vcombine.low %v1389_v7, %v1391_v8  ;;  %v1409_v17 = vcombine.high %v1389_v7, %v1391_v8  ;;  %v1339_v18 = vpop.f32.mrf.mxu1 }
 0x471   : > { %v1400_v19 = vrot.slane %v1392_v10, %v2620_v24  ;;  %v1407_v23 = vrot.slane %v1393_v13, %v2620_v24  ;;  %v1385_v25 = vpop.f32.mrf.mxu0  ;;  %v2244_v18 = vld [vmem:[%s2573_s30] sm:$0xff]  }
 0x472   : > { %v1416_v11 = vrot.slane %v1408_v15, %v2620_v24  ;;  %v1423_v26 = vrot.slane %v1409_v17, %v2620_v24  ;;  %v2114_v27 = vpop.f32.mrf.mxu1  ;;  %v2243_v17 = vld [vmem:[%s2573_s30 + $0x8] sm:$0xff]  }
 0x473   : > { %v2120_v12 = vpop.f32.mrf.mxu0  ;;  %2130 = vmatpush3.bf16.msra.mxu0 %v2243_v17  ;;  %v1626_v27 = vsub.s32 2, %v2617_v20 }
 0x474   : > { %v1424_v29 = vcombine.low %v1400_v19, %v1416_v11  ;;  %v1425_v30 = vcombine.high %v1400_v19, %v1416_v11  ;;  %v1440_v32 = vcombine.low %v1407_v23, %v1423_v26  ;;  %v1441_v33 = vcombine.high %v1407_v23, %v1423_v26  ;;  %2131 = vmatprep.subr.bf16.mxu0 %v2396_v2  ;;  %v2245_v19 = vld [vmem:[%s2578_s25 + $0x18] sm:$0xff]   ;;  %v2246_v23 = vld [vmem:[%s2578_s25 + $0x10] sm:$0xff]  }
 0x475   : > { %v1631_v12 = vsub.s32 3, %v2617_v20  ;;  %v1627_v28 = vrot.slane %v2769_v63, %v1626_v27 }
 0x476   : > { %v1432_v34 = vrot.slane %v1424_v29, %v2623_v31  ;;  %v1439_v35 = vrot.slane %v1425_v30, %v2623_v31  ;;  %v1448_v36 = vrot.slane %v1440_v32, %v2623_v31  ;;  %v1455_v37 = vrot.slane %v1441_v33, %v2623_v31 }
 0x477   : > { %2132 = vmatpush3.bf16.msra.mxu0 %v2244_v18  ;;  %v1632_v32 = vrot.slane %v2769_v63, %v1631_v12 }
 0x478   : > { %v1460_v39 = vcombine.low %v1432_v34, %v1439_v35  ;;  %v2012_v21 = vcombine.high %v1432_v34, %v1439_v35  ;;  %v1476_v22 = vcombine.low %v1448_v36, %v1455_v37  ;;  %v2013_v40 = vcombine.high %v1448_v36, %v1455_v37  ;;  %v2247_v36 = vld [vmem:[%s2578_s25 + $0x8] sm:$0xff]   ;;  %v2248_v37 = vld [vmem:[%s2578_s25] sm:$0xff]  }
 0x47a   : > { %v1467_v41 = vrot.slane %v1460_v39, %v2620_v24  ;;  %v1475_v42 = vrot.slane %v2012_v21, %v2620_v24  ;;  %v1483_v43 = vrot.slane %v1476_v22, %v2620_v24  ;;  %v1491_v44 = vrot.slane %v2013_v40, %v2620_v24 }
 0x47c   : > { %v1493_v45 = vcombine.high %v1467_v41, %v1475_v42  ;;  %v1509_v46 = vcombine.high %v1483_v43, %v1491_v44  ;;  %v1492_v47 = vcombine.low %v1467_v41, %v1475_v42  ;;  %v1508_v48 = vcombine.low %v1483_v43, %v1491_v44 }
 0x47d   : > { %v1712_v44 = vsub.s32 1, %v2617_v20 }
 0x47e   : > { %v1507_v49 = vrot.slane %v1493_v45, %v2623_v31  ;;  %v1523_v50 = vrot.slane %v1509_v46, %v2623_v31  ;;  %v1500_v51 = vrot.slane %v1492_v47, %v2623_v31  ;;  %v1516_v52 = vrot.slane %v1508_v48, %v2623_v31 }
 0x480   : > { %v1526_v53 = vcombine.low %v1507_v49, %v1523_v50  ;;  %v1525_v54 = vcombine.high %v1500_v51, %v1516_v52  ;;  %v1524_v55 = vcombine.low %v1500_v51, %v1516_v52  ;;  %v1527_v24 = vcombine.high %v1507_v49, %v1523_v50 }
 0x482   : > { %1533 = vrot.lane.b32.xlu0 %v1526_v53, %s2405_s18  ;;  %1529 = vrot.lane.b32.xlu1 %v1525_v54, %s2406_s20 }
 0x486   : > { %1537 = vrot.lane.b32.xlu1 %v1527_v24, %s2407_s19 }
 0x4f4   : > { %v1530_v56 = vpop.permute.xlu1 %1529  ;;  %v1534_v57 = vpop.permute.xlu0 %1533 }
 0x4f5   : > { %v1540_v58 = vsel %vm952_vm3, %v1524_v55, %v1530_v56 }
 0x4f6   : > { %v1542_v60 = vsel %vm1541_vm6, %v1540_v58, %v1534_v57 }
 0x4f8   : > { %v1538_v59 = vpop.permute.xlu1 %1537 }
 0x4f9   : > { %v1544_v31 = vsel %vm1543_vm7, %v1542_v60, %v1538_v59  ;;  %v1798_v59 = vsub.s32 4, %v2617_v20 }
 0x4fa   : > { %v1545_v61 = vpack.c.bf16 %v1544_v31, %v1544_v31 }
 0x4fb   : > { %v1799_v60 = vrot.slane %v2769_v63, %v1798_v59 }
 0x4fc   : > { %2126 = vmatmul.mubr.msk.bf16.vlgmr.msra.gmra.mxu1 %vm445_vm2, %v1545_v61 }
 0x4fd   : > { %2145 = vmatprep.mubr.msk.bf16.mxu1 %vm2397_vm1, %v2396_v2  ;;  %2138 = vmatpush3.bf16.msra.mxu1 %v2245_v19 }
 0x4fe   : > { %2139 = vmatprep.subr.bf16.mxu1 %v2396_v2 }
 0x501   : > { %2140 = vmatpush3.bf16.msra.mxu1 %v2246_v23 }
 0x502   : > { %2141 = vmatprep.subr.bf16.mxu1 %v2396_v2 }
 0x505   : > { %2142 = vmatpush3.bf16.msra.mxu1 %v2247_v36 }
 0x506   : > { %2143 = vmatprep.subr.bf16.mxu1 %v2396_v2  ;;  %v1713_v2 = vrot.slane %v2769_v63, %v1712_v44 }
 0x509   : > { %2144 = vmatpush3.bf16.msra.mxu1 %v2248_v37 }
 0x5bc   : > { %v1603_v1 = vpop.f32.mrf.mxu1 }
 0x5bd   : > { %v1604_v3 = vadd.f32 %v1603_v1, %v1553_v0 }
 0x5be   : > { %v2127_v5 = vpop.f32.mrf.mxu1 }
 0x5bf   : > { %v1609_v6 = vadd.f32 %v1604_v3, %v2597_v4 }
 0x5c0   : > { %v1606_v16 = vpop.f32.mrf.mxu1 }
 0x5c1   : > { %v1610_v7 = vsel %vm445_vm2, %v1609_v6, 0.0 }
 0x5c2   : > { %1611 = vadd.xlane.f32.xlu1 %v1610_v7  ;;  %v2128_v8 = vpop.f32.mrf.mxu1 }
 0x64b   : > { %v1612_v9 = vpop.xlane.xlu1 %1611 }
 0x64c   : > { %v1614_v10 = vmul.f32 0.03125, %v1612_v9 }
 0x64e   : > { %v1615_v13 = vsub.f32 %v1609_v6, %v1614_v10 }
 0x650   : > { %v1616_v14 = vmul.f32 %v1615_v13, %v1615_v13 }
 0x652   : > { %v1617_v15 = vsel %vm445_vm2, %v1616_v14, 0.0 }
 0x653   : > { %1618 = vadd.xlane.f32.xlu0 %v1617_v15 }
 0x6dc   : > { %v1619_v25 = vpop.xlane.xlu0 %1618 }
 0x6dd   : > { %v1620_v11 = vmul.f32 0.03125, %v1619_v25 }
 0x6df   : > { %v1621_v26 = vadd.f32 1e-05, %v1620_v11 }
 0x6e1   : > { %2265 = vrsqrt.f32 %v1621_v26 }
 0x6ee   : > { %v2266_v29 = vpop.eup %2265 }
 0x6ef   : > { %v1623_v30 = vmul.f32 %v2266_v29, %v1615_v13 }
 0x6f1   : > { %v1628_v33 = vmul.f32 %v1627_v28, %v1623_v30 }
 0x6f3   : > { %v1633_v34 = vadd.f32 %v1632_v32, %v1628_v33 }
 0x6f5   : > { %v1634_v35 = vpack.c.bf16 %v1633_v34, %v1633_v34 }
 0x6f7   : > { %2134 = vmatmul.mubr.msk.bf16.vlgmr.msra.gmra.mxu0 %vm445_vm2, %v1634_v35 }
 0x7b7   : > { %v1694_v39 = vpop.f32.mrf.mxu0 }
 0x7b8   : > { %v1695_v21 = vadd.f32 %v2017_v38, %v1694_v39 }
 0x7b9   : > { %v2135_v22 = vpop.f32.mrf.mxu0 }
 0x7ba   : > { %v1700_v40 = vmax.f32 %v1695_v21, 0.0 }
 0x7bb   : > { %v1697_v41 = vpop.f32.mrf.mxu0 }
 0x7bc   : > { %v1701_v42 = vpack.c.bf16 %v1700_v40, %v1700_v40 }
 0x7bd   : > { %v2136_v43 = vpop.f32.mrf.mxu0 }
 0x7be   : > { %2146 = vmatmul.mubr.msk.bf16.vlgmr.msra.gmra.mxu1 %vm1738_vm8, %v1701_v42 }
 0x87e   : > { %v1776_v45 = vpop.f32.mrf.mxu1 }
 0x87f   : > { %v1777_v46 = vadd.f32 %v1776_v45, %v1713_v2 }
 0x880   : > { %v2147_v47 = vpop.f32.mrf.mxu1 }
 0x881   : > { %v1782_v48 = vadd.f32 %v1777_v46, %v2597_v4  ;;  %v1803_v4 = vsub.s32 5, %v2617_v20 }
 0x882   : > { %v1779_v49 = vpop.f32.mrf.mxu1 }
 0x883   : > { %v1783_v50 = vsel %vm445_vm2, %v1782_v48, 0.0  ;;  %v1804_v61 = vrot.slane %v2769_v63, %v1803_v4 }
 0x884   : > { %1784 = vadd.xlane.f32.xlu0 %v1783_v50  ;;  %v2148_v51 = vpop.f32.mrf.mxu1 }
 0x90d   : > { %v1785_v52 = vpop.xlane.xlu0 %1784 }
 0x90e   : > { %v1786_v53 = vmul.f32 0.03125, %v1785_v52 }
 0x910   : > { %v1787_v54 = vsub.f32 %v1782_v48, %v1786_v53 }
 0x912   : > { %v1788_v55 = vmul.f32 %v1787_v54, %v1787_v54 }
 0x914   : > { %v1789_v24 = vsel %vm445_vm2, %v1788_v55, 0.0 }
 0x915   : > { %1790 = vadd.xlane.f32.xlu1 %v1789_v24 }
 0x99e   : > { %v1791_v56 = vpop.xlane.xlu1 %1790 }
 0x99f   : > { %v1792_v57 = vmul.f32 0.03125, %v1791_v56 }
 0x9a1   : > { %v1793_v58 = vadd.f32 1e-05, %v1792_v57 }
 0x9a3   : > { %2267 = vrsqrt.f32 %v1793_v58 }
 0x9b0   : > { %v2268_v31 = vpop.eup %2267 }
 0x9b1   : > { %v1795_v62 = vmul.f32 %v2268_v31, %v1787_v54 }
 0x9b3   : > { %v1800_v0 = vmul.f32 %v1799_v60, %v1795_v62  ;;  %1810 = sbr.rel (%p2026_p11) target bundleno = 2489 (0x9b9), region = 60 }
 0x9b5   : > { %v1805_v1 = vadd.f32 %v1804_v61, %v1800_v0 }
 0x9b7   : > { %1806 = vst.msk [vmem:[#allocation2] sm:$0xff] %vm445_vm2, %v1805_v1 }
 0x9b8   : > { %1811 = vst.msk [vmem:[%s2590_s11] sm:$0xff] %vm445_vm2, %v1805_v1 }
 0x9b9 PF: > { %s2028_s25 = sshll.u32 %s2381_s28, 7  ;;  %s1826_s23 = sshll.u32 %s2590_s11, 4  ;;  %s1827_s23 = int_to_ptr.vmem [resolvable:$true] %s1826_s23 }
 0x9ba   : > { %s1824_s10 = scalar_lea.hbm %s2861_s7, %s2028_s25  ;;  %s1813_s15 = scalar_lea.sflag [#allocation5], %s2548_s14 }
 0x9bb   : > { %s2297_s21 = scalar_lea.vmem %s1827_s23, 128  ;;  %s2408_s27 = smov [#allocation6]  }
 0x9bc   : > { %p2298_p1 = scmp.ne.s32.totalorder %s1827_s23, %s2297_s21  ;;  %s2301_s17 = sshll.u32 %s2408_s27, 4  ;;  %s2302_s17 = int_to_ptr.vmem [resolvable:$false] %s2301_s17 }
 0x9bd   : > { %s2303_s13 = scalar_lea.vmem %s2302_s17, 256  ;;  %p2304_p5 = scmp.lt.s32.totalorder %s1827_s23, %s2302_s17 }
 0x9be   : > { %p2299_p2 = pnand %p2298_p1, %p2512_p10  ;;  %p2305_p6 = scmp.lt.s32.totalorder %s2303_s13, %s2297_s21 }
 0x9c0   : > { %p2300_p4 = pneg %p2299_p2  ;;  %p2306_p7 = por %p2305_p6, %p2304_p5 }
 0x9c2   : > { %p2307_p8 = pnand %p2306_p7, %p2300_p4 }
 0x9c4   : > { %2310 = shalt.err (!%p2307_p8)
}
 0x9c5   : > { %s2311_s28 = scalar_lea.hbm %s1824_s10, 128  ;;  %s2315_s11 = scalar_lea.hbm %s2861_s7, 256 }
 0x9c6   : > { %p2312_p12 = scmp.ne.s32.totalorder %s1824_s10, %s2311_s28  ;;  %p2316_p0 = scmp.lt.s32.totalorder %s1824_s10, %s2861_s7 }
 0x9c7   : > { %p2317_p9 = scmp.lt.s32.totalorder %s2315_s11, %s2311_s28 }
 0x9c8   : > { %p2313_p3 = pnand %p2312_p12, %p2512_p10 }
 0x9c9   : > { %p2318_p11 = por %p2317_p9, %p2316_p0 }
 0x9ca   : > { %p2314_p13 = pneg %p2313_p3 }
 0x9cc   : > { %p2319_p1 = pnand %p2318_p11, %p2314_p13 }
 0x9ce   : > { %2322 = shalt.err (!%p2319_p1)
}
 0x9cf   : > { %2151 = dma.vmem_to_hbm [thread:$0]  (%p2512_p10), %s1827_s23, 128, %s1824_s10, %s1813_s15  }
 0x9d0 PF: > { %s2890_s24 = sld [smem:[#allocation14_spill]] }
 0x9d1   : > { %s2891_s26 = sld [smem:[#allocation9_spill]] }
 0x9d2   : > { %s2892_s8 = sld [smem:[#allocation17_spill]] }
 0x9d6   : > { %p2162_p2 = scmp.ge.s32.totalorder %s2890_s24, 2 }
 0x9d7   : > { %s1838_s18 = sand.u32 1, %s2891_s26  }
 0x9d8   : > { %p2893_p4 = scmp.ne.s32.totalorder %s2892_s8, 0  ;;  %s1839_s20 = scalar_lea.sflag [#allocation5], %s1838_s18 }
 0x9da   : > { %p2158_p5 = pnand %p2162_p2, %p2893_p4 }
 0x9dc   : > { %p2159_p6 = pneg %p2158_p5 }
 0x9de   : > { %2360 = dma.done.wait (%p2159_p6), %s1839_s20, 128  }
 0x9df   : > { %2362 = vsyncadd (%p2159_p6), %s1839_s20, 4294967168  ;;  %s23_s8 = sadd.s32 1, %s2890_s24   ;;  %s2894_s24 = sld [smem:[#allocation10_spill]] }
 0x9e0   : > { %p20_p7 = scmp.ge.s32.totalorder %s23_s8, 6   ;;  %s2895_s25 = sld [smem:[#allocation11_spill]] }
 0x9e1   : > { %s2896_s26 = sld [smem:[#allocation18_spill]] }
 0x9e2   : > { %s2897_s27 = sld [smem:[#allocation12_spill]]  ;;  %22 = sbr.rel (!%p20_p7) target bundleno = 10 (0xa), region = 119 }
 0x9e3   : > { %s2898_s28 = sld [smem:[#allocation13_spill]] }
 0x9e4   : > { %s2899_s29 = sld [smem:[#allocation15_spill]] }
 0x9e5   : > { %s2900_s30 = sld [smem:[#allocation16_spill]] }
 0x9e7   :  { %1844 = vsyncpa [#allocation4], 1 }
 0x9e8   :  { %1846 = vsyncpa [#allocation4 + $0x1], 1 }
 0x9e9   :  { %1847 = vsyncpa [#allocation5], 1 }
 0x9ea   :  { %1849 = vsyncpa [#allocation5 + $0x1], 1 }

</bundles_post_ra>
